<compile_context>
chip_gen: v5e
topology: v5e:2x2
jax: 0.10.0
libtpu: 0.0.40
codegen_flags: <defaults>
</compile_context>

<pallas_src>
import functools

import jax
import jax.numpy as jnp
from jax.experimental import pallas as pl
from jax.experimental.pallas import tpu as pltpu


def control_unit_kernel(step_ref,      # scalar-prefetch: [1] int32 (used by index_maps)
                        wp_ref,        # [2d, d]   pos-aware weight for this step (step dim squeezed)
                        bp_ref,        # [1, d]    pos-aware bias for this step (f32)
                        wcq_ref,       # [2, d, d] ctrl_question weight, pre-split halves
                        bcq_ref,       # [1, d]    ctrl_question bias (f32)
                        wattn_ref,     # [1, d]    attn weight (Linear(d, 1), stored transposed)
                        q_ref,         # [TB, 2d]  question encoding tile
                        c_ref,         # [TB, d]   previous control state tile
                        cw_ref,        # [TB, L, d] contextual words tile
                        out_ref):      # [TB, d]   next control state tile
    f32 = jnp.float32
    q = q_ref[...]                                                    # [TB, 2d]
    ctrl = c_ref[...]                                                 # [TB, d]
    cw = cw_ref[...]                                                  # [TB, L, d]
    cdt = cw.dtype                                                    # MXU operand dtype

    # pos_aware_layers[step](question_encoding)  (weight selected via scalar prefetch)
    pos = (jnp.dot(q, wp_ref[...], preferred_element_type=f32)
           + bp_ref[...].astype(f32))                                 # [TB, d] f32

    # ctrl_question(cat([ctrl_state, pos], -1)) with the weight pre-split into
    # [2, d, d] halves -> no lane concat, no in-kernel sublane slice.
    cqi = (jnp.dot(ctrl, wcq_ref[0], preferred_element_type=f32)
           + jnp.dot(pos.astype(cdt), wcq_ref[1], preferred_element_type=f32)
           + bcq_ref[...].astype(f32))                                # [TB, d] f32

    # Fold attn's Linear(d,1) weight into cqi ONCE (a [TB, d] multiply). The attn
    # bias is dropped: a constant shift before softmax over L cancels exactly.
    a = cqi * wattn_ref[...].astype(f32)                              # [TB, d] f32

    cwf = cw.astype(f32)                                              # no-op when cdt == f32

    # Attention logits over L: VPU broadcast-multiply + lane reduce over d.
    # (Per-batch M=1 MXU matvecs would serialize the MXU for negligible FLOPs.)
    cai = jnp.sum(a[:, None, :] * cwf, axis=-1)                       # [TB, L] f32

    # softmax over L (lane axis), f32 math, exact denominator.
    m = jnp.max(cai, axis=-1, keepdims=True)                          # [TB, 1]
    e = jnp.exp(cai - m)                                              # [TB, L]
    cvi = e / jnp.sum(e, axis=-1, keepdims=True)                      # [TB, L]

    # next_ctrl_state = (cvi * contextual_words).sum(L): sublane reduce over L.
    out = jnp.sum(cvi[:, :, None] * cwf, axis=1)                      # [TB, d] f32
    out_ref[...] = out.astype(out_ref.dtype)


def _vmem_limit_bytes():
    """Generation-aware scoped-VMEM request: ~75% of physical per-core VMEM
    (~96 MiB on v5e/v6e's 128 MiB, ~48 MiB on v7x's 64 MiB), leaving headroom
    for Mosaic internal scratch / semaphores."""
    cap = None
    try:
        info = pltpu.get_tpu_info()
        cap = getattr(info, "vmem_capacity_bytes", None)
    except Exception:
        cap = None
    if not cap or cap <= 0:
        cap = 64 * 1024 * 1024        # conservative fallback (v7x per-core value)
    return int(cap) * 3 // 4


def _choose_batch_tile(B, L, d, itemsize, avail_bytes):
    """Largest batch tile (multiple of 8) whose double-buffered activation +
    f32-intermediate footprint fits in `avail_bytes`, capped so the grid has
    >= 2 steps whenever B > 8 (megacore sharding on v7x, DMA/compute overlap
    everywhere)."""
    if B <= 8:
        return B                                   # block == full array on that dim
    per_row = (2 * (L * d + 4 * d) * itemsize      # double-buffered cw + q + ctrl + out
               + 3 * L * d * 4)                    # f32 elementwise intermediates (conservative)
    max_rows = max(8, avail_bytes // per_row)
    megacore_cap = ((-(-B // 2) + 7) // 8) * 8     # round_up(ceil(B/2), 8) < B for B > 8
    tb = min(max_rows, megacore_cap)
    return max(8, (tb // 8) * 8)


def control_unit_forward(step, contextual_words, question_encoding, ctrl_state, params):
    B, L, d = contextual_words.shape
    assert question_encoding.shape == (B, 2 * d)
    assert ctrl_state.shape == (B, d)

    cdt = contextual_words.dtype
    itemsize = jnp.dtype(cdt).itemsize

    # Weights follow the activation dtype (bf16 activations -> native bf16 MXU);
    # biases stay f32 since they add into f32 accumulators.
    w_pos = params["w_pos"].astype(cdt)                       # [max_step, 2d, d]
    b_pos = params["b_pos"].astype(jnp.float32)               # [max_step, 1, d]
    w_cq = params["w_cq"].astype(cdt).reshape(2, d, d)        # pre-split [ctrl | pos] halves
    b_cq = params["b_cq"].astype(jnp.float32)                 # [1, d]
    w_attn = params["w_attn"].astype(cdt)                     # [1, d]
    # params["b_attn"] intentionally unused: constant shift before softmax(dim=1)
    # cancels exactly (softmax shift invariance), so it is dead compute.

    # Every input spec is double-buffered by Pallas (weights included); count
    # weight blocks at 2x with their true itemsizes.
    weight_bytes = 2 * ((2 * d * d) * itemsize        # pos-aware weight block
                        + d * 4                       # pos-aware bias (f32)
                        + (2 * d * d) * itemsize      # ctrl_question weight halves
                        + d * 4                       # ctrl_question bias (f32)
                        + d * itemsize)               # attn weight
    vmem_limit = _vmem_limit_bytes()
    avail = max(1 << 20, vmem_limit - weight_bytes - (2 << 20))   # Mosaic-scratch margin
    TB = _choose_batch_tile(B, L, d, itemsize, avail)
    nb = pl.cdiv(B, TB)                                            # ragged tail is write-masked

    step_arr = jnp.asarray([step], dtype=jnp.int32)

    grid_spec = pltpu.PrefetchScalarGridSpec(
        num_scalar_prefetch=1,
        grid=(nb,),
        in_specs=[
            # step-selected position-aware weight / bias (leading step dim squeezed)
            pl.BlockSpec((pl.Squeezed(), 2 * d, d), lambda b, s: (s[0], 0, 0)),
            pl.BlockSpec((pl.Squeezed(), 1, d),     lambda b, s: (s[0], 0, 0)),
            # ctrl_question weight halves / bias (resident across batch tiles)
            pl.BlockSpec((2, d, d),                 lambda b, s: (0, 0, 0)),
            pl.BlockSpec((1, d),                    lambda b, s: (0, 0)),
            # attn weight (resident)
            pl.BlockSpec((1, d),                    lambda b, s: (0, 0)),
            # activations, tiled over batch
            pl.BlockSpec((TB, 2 * d),               lambda b, s: (b, 0)),
            pl.BlockSpec((TB, d),                   lambda b, s: (b, 0)),
            pl.BlockSpec((TB, L, d),                lambda b, s: (b, 0, 0)),
        ],
        out_specs=pl.BlockSpec((TB, d), lambda b, s: (b, 0)),
    )

    # Advisory cost estimate so XLA schedules/overlaps the call sensibly.
    cost = pl.CostEstimate(
        flops=2 * B * (2 * d) * d            # pos-aware matmul
              + 2 * B * (2 * d) * d          # ctrl_question (two d x d halves)
              + 6 * B * L * d,               # logits + weighted sum (VPU mul + reduce)
        transcendentals=B * L,
        bytes_accessed=(B * L * d + B * 2 * d + 2 * B * d) * itemsize + weight_bytes // 2,
    )

    return pl.pallas_call(
        control_unit_kernel,
        out_shape=jax.ShapeDtypeStruct((B, d), cdt),
        grid_spec=grid_spec,
        compiler_params=pltpu.CompilerParams(
            dimension_semantics=("parallel",),
            vmem_limit_bytes=int(vmem_limit)),
        cost_estimate=cost,
    )(step_arr, w_pos, b_pos, w_cq, b_cq, w_attn,
      question_encoding.astype(cdt), ctrl_state.astype(cdt), contextual_words)


def make_params(key, dim, max_step):
    """Deterministic synthetic parameters (same shapes as the PyTorch module)."""
    ks = jax.random.split(key, 6)
    scale = 0.05
    return {
        # pos_aware_layers[i]: Linear(2*dim, dim)  -> stacked over steps
        "w_pos":  scale * jax.random.normal(ks[0], (max_step, 2 * dim, dim), jnp.float32),
        "b_pos":  scale * jax.random.normal(ks[1], (max_step, 1, dim), jnp.float32),
        # ctrl_question: Linear(2*dim, dim)
        "w_cq":   scale * jax.random.normal(ks[2], (2 * dim, dim), jnp.float32),
        "b_cq":   scale * jax.random.normal(ks[3], (1, dim), jnp.float32),
        # attn: Linear(dim, 1)  (stored as [1, dim] for lane-friendly layout)
        "w_attn": scale * jax.random.normal(ks[4], (1, dim), jnp.float32),
        "b_attn": scale * jax.random.normal(ks[5], (1, 1), jnp.float32),
    }


def reference_forward(step, contextual_words, question_encoding, ctrl_state, params):
    """Pure-JAX reference mirroring the PyTorch forward (bias included)."""
    wp = params["w_pos"][step]
    bp = params["b_pos"][step, 0]
    pos = question_encoding @ wp + bp
    cqi_in = jnp.concatenate([ctrl_state, pos], axis=-1)
    cqi = cqi_in @ params["w_cq"] + params["b_cq"][0]
    ctx = cqi[:, None, :] * contextual_words
    cai = ctx @ params["w_attn"][0][:, None] + params["b_attn"][0, 0]   # [B, L, 1]
    cvi = jax.nn.softmax(cai, axis=1)
    return (cvi * contextual_words).sum(axis=1)


def _check(step, cw, q, c, params):
    fwd = jax.jit(functools.partial(control_unit_forward, step))
    out = jax.block_until_ready(fwd(cw, q, c, params))
    ref = reference_forward(step, cw, q, c, params)
    assert out.shape == ref.shape
    # Softmax denominator is exact now; remaining difference is MXU-vs-XLA f32
    # matmul emulation, so the tolerance is kept comfortably loose.
    assert jnp.allclose(out, ref, atol=1e-2, rtol=1e-2), (
        f"max abs err: {jnp.max(jnp.abs(out - ref))}")


if __name__ == "__main__":
    dim, max_step = 32, 4

    key = jax.random.PRNGKey(0)
    k_params, *ks = jax.random.split(key, 10)
    params = make_params(k_params, dim, max_step)

    # Case 1: tiny batch -> single resident block, grid=(1,).
    B, L = 2, 8
    _check(2,
           jax.random.normal(ks[0], (B, L, dim), jnp.float32),
           jax.random.normal(ks[1], (B, 2 * dim), jnp.float32),
           jax.random.normal(ks[2], (B, dim), jnp.float32),
           params)

    # Case 2: batch-tiled, pipelined path with a ragged tail (24 rows, TB=16 -> grid=(2,)).
    B2, L2 = 24, 8
    _check(1,
           jax.random.normal(ks[3], (B2, L2, dim), jnp.float32),
           jax.random.normal(ks[4], (B2, 2 * dim), jnp.float32),
           jax.random.normal(ks[5], (B2, dim), jnp.float32),
           params)

    # Case 3: batch not a multiple of 8 -> cdiv grid with write-masked tail (13 = 8 + 5).
    B3, L3 = 13, 8
    _check(3,
           jax.random.normal(ks[6], (B3, L3, dim), jnp.float32),
           jax.random.normal(ks[7], (B3, 2 * dim), jnp.float32),
           jax.random.normal(ks[8], (B3, dim), jnp.float32),
           params)

    print("KERNEL_OK")
</pallas_src>

<mosaic_0001>
module attributes {stable_mosaic.version = 11 : i64} {
  func.func @control_unit_kernel(%arg0: i32, %arg1: memref<1xi32, #tpu.memory_space<smem>>, %arg2: memref<1x64x32xf32, #tpu.memory_space<vmem>>, %arg3: memref<1x1x32xf32, #tpu.memory_space<vmem>>, %arg4: memref<2x32x32xf32, #tpu.memory_space<vmem>>, %arg5: memref<1x32xf32, #tpu.memory_space<vmem>>, %arg6: memref<1x32xf32, #tpu.memory_space<vmem>>, %arg7: memref<2x64xf32, #tpu.memory_space<vmem>>, %arg8: memref<2x32xf32, #tpu.memory_space<vmem>>, %arg9: memref<2x8x32xf32, #tpu.memory_space<vmem>>, %arg10: memref<2x32xf32, #tpu.memory_space<vmem>>) attributes {dimension_semantics = [#tpu.dimension_semantics<parallel>], iteration_bounds = array<i64: 1>, scalar_prefetch = 1 : i64, scratch_operands = 0 : i64, tpu.core_type = #tpu.core_type<tc>, window_params = [{transform_indices = @transform_0, window_bounds = array<i64: 1, 64, 32>}, {transform_indices = @transform_1, window_bounds = array<i64: 1, 1, 32>}, {pipeline_mode = #tpu.pipeline_mode<synchronous>, transform_indices = @transform_2, window_bounds = array<i64: 2, 32, 32>}, {pipeline_mode = #tpu.pipeline_mode<synchronous>, transform_indices = @transform_3, window_bounds = array<i64: 1, 32>}, {pipeline_mode = #tpu.pipeline_mode<synchronous>, transform_indices = @transform_4, window_bounds = array<i64: 1, 32>}, {transform_indices = @transform_5, window_bounds = array<i64: 2, 64>}, {transform_indices = @transform_6, window_bounds = array<i64: 2, 32>}, {transform_indices = @transform_7, window_bounds = array<i64: 2, 8, 32>}, {transform_indices = @transform_8, window_bounds = array<i64: 2, 32>}]} {
    %c0 = arith.constant 0 : index
    %c0_0 = arith.constant 0 : index
    %0 = vector.load %arg7[%c0, %c0_0] : memref<2x64xf32, #tpu.memory_space<vmem>>, vector<2x64xf32>
    %c0_1 = arith.constant 0 : index
    %c0_2 = arith.constant 0 : index
    %1 = vector.load %arg8[%c0_1, %c0_2] : memref<2x32xf32, #tpu.memory_space<vmem>>, vector<2x32xf32>
    %c0_3 = arith.constant 0 : index
    %c0_4 = arith.constant 0 : index
    %c0_5 = arith.constant 0 : index
    %2 = vector.load %arg9[%c0_3, %c0_4, %c0_5] : memref<2x8x32xf32, #tpu.memory_space<vmem>>, vector<2x8x32xf32>
    %c0_6 = arith.constant 0 : index
    %c0_7 = arith.constant 0 : index
    %c0_8 = arith.constant 0 : index
    %3 = vector.load %arg2[%c0_6, %c0_7, %c0_8] : memref<1x64x32xf32, #tpu.memory_space<vmem>>, vector<1x64x32xf32>
    %4 = vector.shape_cast %3 : vector<1x64x32xf32> to vector<64x32xf32>
    %cst = arith.constant dense<0.000000e+00> : vector<2x32xf32>
    %5 = tpu.matmul %0, %4, %cst {dimension_numbers = #tpu.dot_dimension_numbers<[1], [0], [0], [1], [0, 0, 1, 1], [], []>} : vector<2x64xf32>, vector<64x32xf32>, vector<2x32xf32> -> vector<2x32xf32>
    %c0_9 = arith.constant 0 : index
    %c0_10 = arith.constant 0 : index
    %c0_11 = arith.constant 0 : index
    %6 = vector.load %arg3[%c0_9, %c0_10, %c0_11] : memref<1x1x32xf32, #tpu.memory_space<vmem>>, vector<1x1x32xf32>
    %7 = vector.shape_cast %6 : vector<1x1x32xf32> to vector<1x32xf32>
    %8 = vector.broadcast %7 : vector<1x32xf32> to vector<2x32xf32>
    %9 = arith.addf %5, %8 : vector<2x32xf32>
    %c0_12 = arith.constant 0 : index
    %c0_13 = arith.constant 0 : index
    %c0_14 = arith.constant 0 : index
    %10 = vector.load %arg4[%c0_12, %c0_13, %c0_14] : memref<2x32x32xf32, #tpu.memory_space<vmem>>, vector<1x32x32xf32>
    %11 = vector.shape_cast %10 : vector<1x32x32xf32> to vector<32x32xf32>
    %cst_15 = arith.constant dense<0.000000e+00> : vector<2x32xf32>
    %12 = tpu.matmul %1, %11, %cst_15 {dimension_numbers = #tpu.dot_dimension_numbers<[1], [0], [0], [1], [0, 0, 1, 1], [], []>} : vector<2x32xf32>, vector<32x32xf32>, vector<2x32xf32> -> vector<2x32xf32>
    %c1 = arith.constant 1 : index
    %c0_16 = arith.constant 0 : index
    %c0_17 = arith.constant 0 : index
    %13 = vector.load %arg4[%c1, %c0_16, %c0_17] : memref<2x32x32xf32, #tpu.memory_space<vmem>>, vector<1x32x32xf32>
    %14 = vector.shape_cast %13 : vector<1x32x32xf32> to vector<32x32xf32>
    %cst_18 = arith.constant dense<0.000000e+00> : vector<2x32xf32>
    %15 = tpu.matmul %9, %14, %cst_18 {dimension_numbers = #tpu.dot_dimension_numbers<[1], [0], [0], [1], [0, 0, 1, 1], [], []>} : vector<2x32xf32>, vector<32x32xf32>, vector<2x32xf32> -> vector<2x32xf32>
    %16 = arith.addf %12, %15 : vector<2x32xf32>
    %c0_19 = arith.constant 0 : index
    %c0_20 = arith.constant 0 : index
    %17 = vector.load %arg5[%c0_19, %c0_20] : memref<1x32xf32, #tpu.memory_space<vmem>>, vector<1x32xf32>
    %18 = vector.broadcast %17 : vector<1x32xf32> to vector<2x32xf32>
    %19 = arith.addf %16, %18 : vector<2x32xf32>
    %c0_21 = arith.constant 0 : index
    %c0_22 = arith.constant 0 : index
    %20 = vector.load %arg6[%c0_21, %c0_22] : memref<1x32xf32, #tpu.memory_space<vmem>>, vector<1x32xf32>
    %21 = vector.broadcast %20 : vector<1x32xf32> to vector<2x32xf32>
    %22 = arith.mulf %19, %21 : vector<2x32xf32>
    %23 = vector.shape_cast %22 : vector<2x32xf32> to vector<2x1x32xf32>
    %24 = vector.broadcast %23 : vector<2x1x32xf32> to vector<2x8x32xf32>
    %25 = arith.mulf %24, %2 : vector<2x8x32xf32>
    %cst_23 = arith.constant dense<0.000000e+00> : vector<2x8xf32>
    %26 = vector.multi_reduction <add>, %25, %cst_23 [2] : vector<2x8x32xf32> to vector<2x8xf32>
    %cst_24 = arith.constant dense<0xFF800000> : vector<2xf32>
    %27 = vector.multi_reduction <maximumf>, %26, %cst_24 [1] : vector<2x8xf32> to vector<2xf32>
    %28 = vector.shape_cast %27 : vector<2xf32> to vector<2x1xf32>
    %29 = vector.broadcast %28 : vector<2x1xf32> to vector<2x8xf32>
    %30 = arith.subf %26, %29 : vector<2x8xf32>
    %31 = math.exp %30 : vector<2x8xf32>
    %cst_25 = arith.constant dense<0.000000e+00> : vector<2xf32>
    %32 = vector.multi_reduction <add>, %31, %cst_25 [1] : vector<2x8xf32> to vector<2xf32>
    %33 = vector.shape_cast %32 : vector<2xf32> to vector<2x1xf32>
    %34 = vector.broadcast %33 : vector<2x1xf32> to vector<2x8xf32>
    %35 = arith.divf %31, %34 : vector<2x8xf32>
    %36 = vector.shape_cast %35 : vector<2x8xf32> to vector<2x8x1xf32>
    %37 = vector.broadcast %36 : vector<2x8x1xf32> to vector<2x8x32xf32>
    %38 = arith.mulf %37, %2 : vector<2x8x32xf32>
    %cst_26 = arith.constant dense<0.000000e+00> : vector<2x32xf32>
    %39 = vector.multi_reduction <add>, %38, %cst_26 [1] : vector<2x8x32xf32> to vector<2x32xf32>
    %c0_27 = arith.constant 0 : index
    %c0_28 = arith.constant 0 : index
    %40 = vector.load %arg10[%c0_27, %c0_28] : memref<2x32xf32, #tpu.memory_space<vmem>>, vector<2x32xf32>
    tpu.vector_store %arg10[%c0_27, %c0_28], %39 {strides = array<i32>} : memref<2x32xf32, #tpu.memory_space<vmem>>, vector<2x32xf32>,
    return
  }
  func.func @transform_0(%arg0: i32, %arg1: memref<1xi32, #tpu.memory_space<smem>>) -> (i32, i32, i32) {
    %c0 = arith.constant 0 : index
    %0 = memref.load %arg1[%c0] : memref<1xi32, #tpu.memory_space<smem>>
    %c0_i32 = arith.constant 0 : i32
    %c0_i32_0 = arith.constant 0 : i32
    %c0_i32_1 = arith.constant 0 : i32
    return %0, %c0_i32, %c0_i32_0 : i32, i32, i32
  }
  func.func @transform_1(%arg0: i32, %arg1: memref<1xi32, #tpu.memory_space<smem>>) -> (i32, i32, i32) {
    %c0 = arith.constant 0 : index
    %0 = memref.load %arg1[%c0] : memref<1xi32, #tpu.memory_space<smem>>
    %c0_i32 = arith.constant 0 : i32
    %c0_i32_0 = arith.constant 0 : i32
    %c0_i32_1 = arith.constant 0 : i32
    return %0, %c0_i32, %c0_i32_0 : i32, i32, i32
  }
  func.func @transform_2(%arg0: i32, %arg1: memref<1xi32, #tpu.memory_space<smem>>) -> (i32, i32, i32) {
    %c0_i32 = arith.constant 0 : i32
    %c0_i32_0 = arith.constant 0 : i32
    %c0_i32_1 = arith.constant 0 : i32
    %c0_i32_2 = arith.constant 0 : i32
    return %c0_i32, %c0_i32_0, %c0_i32_1 : i32, i32, i32
  }
  func.func @transform_3(%arg0: i32, %arg1: memref<1xi32, #tpu.memory_space<smem>>) -> (i32, i32) {
    %c0_i32 = arith.constant 0 : i32
    %c0_i32_0 = arith.constant 0 : i32
    %c0_i32_1 = arith.constant 0 : i32
    return %c0_i32, %c0_i32_0 : i32, i32
  }
  func.func @transform_4(%arg0: i32, %arg1: memref<1xi32, #tpu.memory_space<smem>>) -> (i32, i32) {
    %c0_i32 = arith.constant 0 : i32
    %c0_i32_0 = arith.constant 0 : i32
    %c0_i32_1 = arith.constant 0 : i32
    return %c0_i32, %c0_i32_0 : i32, i32
  }
  func.func @transform_5(%arg0: i32, %arg1: memref<1xi32, #tpu.memory_space<smem>>) -> (i32, i32) {
    %c0_i32 = arith.constant 0 : i32
    %c0_i32_0 = arith.constant 0 : i32
    return %arg0, %c0_i32 : i32, i32
  }
  func.func @transform_6(%arg0: i32, %arg1: memref<1xi32, #tpu.memory_space<smem>>) -> (i32, i32) {
    %c0_i32 = arith.constant 0 : i32
    %c0_i32_0 = arith.constant 0 : i32
    return %arg0, %c0_i32 : i32, i32
  }
  func.func @transform_7(%arg0: i32, %arg1: memref<1xi32, #tpu.memory_space<smem>>) -> (i32, i32, i32) {
    %c0_i32 = arith.constant 0 : i32
    %c0_i32_0 = arith.constant 0 : i32
    %c0_i32_1 = arith.constant 0 : i32
    return %arg0, %c0_i32, %c0_i32_0 : i32, i32, i32
  }
  func.func @transform_8(%arg0: i32, %arg1: memref<1xi32, #tpu.memory_space<smem>>) -> (i32, i32) {
    %c0_i32 = arith.constant 0 : i32
    %c0_i32_0 = arith.constant 0 : i32
    return %arg0, %c0_i32 : i32, i32
  }
}

</mosaic_0001>

<bundles_post_ra>
// kernel: control_unit_forward.1
= control target key start
LH: loop header
LB: loop body
LE: loop exit
PB: predicated region body
PF: predicated region fallthrough
CT: control target
= control target key end

     0   :  { %s501_s0 = inlined_call_operand.<no memory space> [shape: s32[1], index: 0, kind: input, shape index: {}]   ;;  %s502_s1 = inlined_call_operand.vmem [shape: f32[4,64,32], index: 1, kind: input, shape index: {}]   ;;  %s503_s2 = inlined_call_operand.vmem [shape: f32[4,1,32], index: 2, kind: input, shape index: {}]   ;;  %s504_s3 = inlined_call_operand.vmem [shape: f32[2,32,32], index: 3, kind: input, shape index: {}]   ;;  %s505_s4 = inlined_call_operand.vmem [shape: f32[1,32], index: 4, kind: input, shape index: {}]   ;;  %s506_s5 = inlined_call_operand.vmem [shape: f32[1,32], index: 5, kind: input, shape index: {}]   ;;  %s507_s6 = inlined_call_operand.vmem [shape: f32[2,64], index: 6, kind: input, shape index: {}]   ;;  %s508_s7 = inlined_call_operand.vmem [shape: f32[2,32], index: 7, kind: input, shape index: {}]   ;;  %s509_s8 = inlined_call_operand.vmem [shape: f32[2,8,32], index: 8, kind: input, shape index: {}]   ;;  %s510_s9 = inlined_call_operand.hbm [shape: f32[2,32], index: 9, kind: output, shape index: {}]  }
   0x1   :  { %p55_p0 = scmp.lt.s32.totalorder %s501_s0, 3  ;;  %v109_v0 = vld [vmem:[%s504_s3 + $0x18] sm:$0xff]  ;;  %v108_v1 = vld [vmem:[%s504_s3 + $0x10] sm:$0xff]  ;;  %v107_v3 = vld [vmem:[%s504_s3 + $0x8] sm:$0xff] }
   0x2   :  { %154 = vmatpush.msra.mxu2 %v109_v0  ;;  %v323_v2 = vld [vmem:[%s504_s3 + $0x38] sm:$0xff]  ;;  %v322_v4 = vld [vmem:[%s504_s3 + $0x30] sm:$0xff] }
   0x3   :  { %s512_s0 = smov (!%p55_p0, %s501_s0), 3  ;;  %131 = vmatpush.msra.mxu1 %v323_v2 }
   0x4   :  { %155 = vmatpush.msra.mxu2 %v108_v1 }
   0x5   :  { %15 = vsyncpa [#allocation5], 0  ;;  %s326_s23 = sshll.u32 %s512_s0, 6  ;;  %v106_v5 = vld [vmem:[%s504_s3] sm:$0xff]  ;;  %132 = vmatpush.msra.mxu1 %v322_v4  ;;  %s64_s28 = scalar_lea.vmem %s503_s2, %s512_s0  ;;  %vm115_vm0 = vcmask 261120   ;;  %vm82_vm1 = vcmask 523264   ;;  %v188_v38 = vlaneseq }
   0x6   :  { %s59_s10 = scalar_lea.vmem %s502_s1, %s326_s23  ;;  %156 = vmatpush.msra.mxu2 %v107_v3  ;;  %v67_v6 = vld [vmem:[%s508_s7] sm:$0x3]  ;;  %v321_v16 = vld [vmem:[%s504_s3 + $0x28] sm:$0xff]  ;;  %vm192_vm2 = vcmask 1041409   ;;  %vm195_vm3 = vcmask 58368   ;;  %v369_v45 = vmov 0  }
   0x7   :  { %v77_v7 = vld [vmem:[%s59_s10 + $0x38] sm:$0xff]  ;;  %v76_v8 = vld [vmem:[%s59_s10 + $0x30] sm:$0xff]  ;;  %v75_v9 = vld [vmem:[%s59_s10 + $0x28] sm:$0xff]  ;;  %133 = vmatpush.msra.mxu1 %v321_v16  ;;  %v189_v39 = vand.u32 127, %v188_v38  ;;  %330 = vset.pattern.permute.xlu2 %v369_v45  ;;  %s299_s22 = sshll.u32 %s510_s9, 4  ;;  %vm290_vm12 = vcmask 254976   ;;  %s300_s22 = int_to_ptr.hbm [resolvable:$true] %s299_s22 }
   0x8   :  { %94 = vmatpush.msra.mxu0 %v77_v7  ;;  %157 = vmatpush.msra.mxu2 %v106_v5  ;;  %v74_v10 = vld [vmem:[%s59_s10 + $0x20] sm:$0xff]  ;;  %v73_v11 = vld [vmem:[%s59_s10 + $0x18] sm:$0xff]  ;;  %v72_v12 = vld [vmem:[%s59_s10 + $0x10] sm:$0xff] }
   0x9   :  { %325 = vmatmul.msk.f32.vlgmr.msra.gmra.mxu2 %vm115_vm0, %v67_v6  ;;  %v71_v13 = vld [vmem:[%s59_s10 + $0x8] sm:$0xff]  ;;  %v70_v14 = vld [vmem:[%s59_s10] sm:$0xff]  ;;  %329 = vset.pattern.permute.xlu1 %v369_v45 }
   0xa   :  { %95 = vmatpush.msra.mxu0 %v76_v8  ;;  %v66_v15 = vld [vmem:[%s507_s6] sm:$0x3]  ;;  %v485_v34 = vld [vmem:[%s509_s8 + $0x8] sm:$0xff]  ;;  %331 = vset.pattern.permute.xlu0 %v369_v45 }
   0xb   :  { %v320_v17 = vld [vmem:[%s504_s3 + $0x20] sm:$0xff] }
   0xc   :  { %96 = vmatpush.msra.mxu0 %v75_v9  ;;  %134 = vmatpush.msra.mxu1 %v320_v17  ;;  %v332_v18 = vld [vmem:[%s64_s28] ss:$0 sm:$0xff] }
   0xd   :  { %v333_v22 = vld [vmem:[%s505_s4] ss:$0 sm:$0xff] }
   0xe   :  { %97 = vmatpush.msra.mxu0 %v74_v10  ;;  %v334_v25 = vld [vmem:[%s506_s5] ss:$0 sm:$0xff]  ;;  %s370_s5 = smov [#allocation4]  }
   0xf   :  { %v478_v28 = vld [vmem:[%s509_s8] sm:$0xff]  ;;  %s297_s8 = sshll.u32 %s370_s5, 4  ;;  %s298_s8 = int_to_ptr.vmem [resolvable:$true] %s297_s8 }
  0x10   :  { %98 = vmatpush.msra.mxu0 %v73_v11 }
  0x12   :  { %99 = vmatpush.msra.mxu0 %v72_v12 }
  0x14   :  { %100 = vmatpush.msra.mxu0 %v71_v13 }
  0x16   :  { %101 = vmatpush.msra.mxu0 %v70_v14 }
  0x17   :  { %319 = vmatmul.msk.f32.vlgmr.msra.gmra.mxu0 %vm82_vm1, %v66_v15 }
  0x8c   :  { %v159_v21 = vpop.f32.mrf.mxu2 }
  0x94   :  { %v103_v19 = vpop.f32.mrf.mxu0 }
  0x95   :  { %v104_v20 = vadd.f32 %v332_v18, %v103_v19 }
  0x97   :  { %324 = vmatmul.msk.f32.vlgmr.msra.gmra.mxu1 %vm115_vm0, %v104_v20 }
 0x114   :  { %v136_v23 = vpop.f32.mrf.mxu1 }
 0x115   :  { %v160_v24 = vadd.f32 %v159_v21, %v136_v23 }
 0x117   :  { %v166_v26 = vadd.f32 %v333_v22, %v160_v24 }
 0x119   :  { %v171_v27 = vmul.f32 %v334_v25, %v166_v26 }
 0x11b   :  { %v174_v29 = vperm.slane %v171_v27, 0  ;;  %v173_v30 = vrot.slane %v171_v27, 1 }
 0x11d   :  { %v178_v31 = vmul.f32 %v174_v29, %v478_v28  ;;  %v175_v33 = vperm.slane %v173_v30, 0 }
 0x11f   :  { %v180_v32 = vsel %vm115_vm0, %v178_v31, 0.0  ;;  %v179_v35 = vmul.f32 %v175_v33, %v485_v34 }
 0x120   :  { %181 = vadd.xlane.f32.xlu0 %v180_v32 }
 0x121   :  { %v183_v36 = vsel %vm115_vm0, %v179_v35, 0.0 }
 0x128   :  { %184 = vadd.xlane.f32.xlu0 %v183_v36 }
 0x193   :  { %v182_v37 = vpop.xlane.xlu0 %181 }
 0x194   :  { %v190_v41 = vperm.slane %v182_v37, %v189_v39 }
 0x19b   :  { %v185_v40 = vpop.xlane.xlu0 %184 }
 0x19c   :  { %v191_v42 = vperm.slane %v185_v40, %v189_v39 }
 0x19e   :  { %v193_v43 = vsel %vm192_vm2, %v191_v42, %v190_v41 }
 0x19f   :  { %v196_v44 = vsel %vm195_vm3, %v193_v43, -inf }
 0x1a0   :  { %197 = vmax.xlane.f32.xlu1 %v196_v44 }
 0x213   :  { %v198_v46 = vpop.xlane.xlu1 %197 }
 0x214   :  { %v200_v47 = vperm.slane %v198_v46, 0  ;;  %v201_v48 = vperm.slane %v198_v46, 1 }
 0x216   :  { %v204_v49 = vsub.f32 %v182_v37, %v200_v47  ;;  %v205_v50 = vsub.f32 %v185_v40, %v201_v48 }
 0x218   :  { %v206_v51 = vmul.f32 1.442695, %v204_v49  ;;  %v208_v52 = vmul.f32 1.442695, %v205_v50 }
 0x21a   :  { %335 = vpow2.f32 %v206_v51 }
 0x21b   :  { %337 = vpow2.f32 %v208_v52 }
 0x220   :  { %v336_v53 = vpop.eup %335 }
 0x221   :  { %v338_v54 = vpop.eup %337  ;;  %213 = vperm.xlu1 %329, %v336_v53  }
 0x222   :  { %216 = vperm.xlu2 %330, %v338_v54  }
 0x27c   :  { %v217_v55 = vpop.permute.xlu2 %216 }
 0x27d   :  { %v219_v57 = vperm.slane %v217_v55, %v189_v39 }
 0x293   :  { %v214_v56 = vpop.permute.xlu1 %213 }
 0x294   :  { %v218_v58 = vperm.slane %v214_v56, %v189_v39 }
 0x296   :  { %v220_v59 = vsel %vm192_vm2, %v219_v57, %v218_v58 }
 0x297   :  { %v222_v60 = vsel %vm195_vm3, %v220_v59, 0.0 }
 0x298   :  { %223 = vadd.xlane.f32.xlu2 %v222_v60 }
 0x30b   :  { %v224_v61 = vpop.xlane.xlu2 %223 }
 0x30c   :  { %v226_v62 = vperm.slane %v224_v61, 0  ;;  %v227_v63 = vperm.slane %v224_v61, 1 }
 0x30e   :  { %339 = vrcp.f32 %v226_v62  ;;  %v241_v6 = vand.u32 2147483648, %v226_v62  ;;  %v256_v7 = vand.u32 2147483648, %v227_v63  ;;  %v239_v9 = vand.u32 2147483647, %v226_v62 }
 0x30f   :  { %341 = vrcp.f32 %v227_v63  ;;  %v254_v11 = vand.u32 2147483647, %v227_v63  ;;  %vm235_vm6 = vweird.f32 %v226_v62  ;;  %vm250_vm7 = vweird.f32 %v227_v63 }
 0x310   :  { %v242_v14 = vor.u32 1.1754944e-38, %v241_v6  ;;  %v257_v15 = vor.u32 1.1754944e-38, %v256_v7  ;;  %vm240_vm10 = vcmp.eq.f32.partialorder %v239_v9, 8.507059e+37 }
 0x311   :  { %vm255_vm11 = vcmp.eq.f32.partialorder %v254_v11, 8.507059e+37 }
 0x314   :  { %v340_v0 = vpop.eup %339 }
 0x315   :  { %v342_v1 = vpop.eup %341  ;;  %v231_v2 = vmul.f32 %v340_v0, %v226_v62  ;;  %vm236_vm4 = vweird.f32 %v340_v0 }
 0x316   :  { %v246_v3 = vmul.f32 %v342_v1, %v227_v63  ;;  %vm251_vm5 = vweird.f32 %v342_v1  ;;  %vm237_vm8 = vmor %vm235_vm6, %vm236_vm4 }
 0x317   :  { %v232_v4 = vsub.f32 1.0, %v231_v2  ;;  %vm252_vm9 = vmor %vm250_vm7, %vm251_vm5 }
 0x318   :  { %v247_v5 = vsub.f32 1.0, %v246_v3 }
 0x319   :  { %v233_v8 = vmul.f32 %v340_v0, %v232_v4 }
 0x31a   :  { %v248_v10 = vmul.f32 %v342_v1, %v247_v5 }
 0x31b   :  { %v234_v12 = vadd.f32 %v340_v0, %v233_v8 }
 0x31c   :  { %v249_v13 = vadd.f32 %v342_v1, %v248_v10 }
 0x31d   :  { %v238_v16 = vsel %vm237_vm8, %v340_v0, %v234_v12 }
 0x31e   :  { %v253_v17 = vsel %vm252_vm9, %v342_v1, %v249_v13  ;;  %v243_v18 = vsel %vm240_vm10, %v242_v14, %v238_v16 }
 0x31f   :  { %v258_v19 = vsel %vm255_vm11, %v257_v15, %v253_v17  ;;  %v244_v20 = vmul.f32 %v336_v53, %v243_v18 }
 0x320   :  { %v259_v21 = vmul.f32 %v338_v54, %v258_v19 }
 0x321   :  { %262 = vperm.xlu0 %331, %v244_v20  }
 0x322   :  { %267 = vperm.xlu1 %329, %v259_v21  }
 0x393   :  { %v263_v22 = vpop.permute.xlu0 %262 }
 0x394   :  { %v268_v23 = vpop.permute.xlu1 %267  ;;  %v270_v24 = vmul.f32 %v263_v22, %v478_v28 }
 0x395   :  { %v271_v25 = vmul.f32 %v268_v23, %v485_v34 }
 0x396   :  { %v272_v26 = vsel %vm115_vm0, %v270_v24, 0.0 }
 0x397   :  { %v279_v27 = vsel %vm115_vm0, %v271_v25, 0.0  ;;  %v273_v29 = vrot.slane %v272_v26, 4 }
 0x398   :  { %v280_v30 = vrot.slane %v279_v27, 4 }
 0x399   :  { %v274_v31 = vadd.f32 %v273_v29, %v272_v26 }
 0x39a   :  { %v281_v32 = vadd.f32 %v280_v30, %v279_v27 }
 0x39b   :  { %v275_v33 = vrot.slane %v274_v31, 2 }
 0x39c   :  { %v282_v35 = vrot.slane %v281_v32, 2 }
 0x39d   :  { %v276_v36 = vadd.f32 %v275_v33, %v274_v31 }
 0x39e   :  { %v283_v37 = vadd.f32 %v282_v35, %v281_v32 }
 0x39f   :  { %v277_v38 = vrot.slane %v276_v36, 1 }
 0x3a0   :  { %v284_v39 = vrot.slane %v283_v37, 1 }
 0x3a1   :  { %v278_v28 = vadd.f32 %v277_v38, %v276_v36 }
 0x3a2   :  { %v285_v34 = vadd.f32 %v284_v39, %v283_v37 }
 0x3a4   :  { %v288_v40 = vsel %vm192_vm2, %v285_v34, %v278_v28 }
 0x3a5   :  { %291 = vst.msk [vmem:[#allocation4] sm:$0x3] %vm290_vm12, %v288_v40 }
 0x3a6   :  { %302 = dma.vmem_to_hbm [thread:$0]  %s298_s8, 32, %s300_s22, [#allocation5]  }
 0x3a7   :  { %367 = dma.done.wait [#allocation5], 32  }
 0x3a8   :  { %368 = vsyncadd [#allocation5], 4294967264 }
 0x3a9   :  { %307 = vsyncpa [#allocation5], 1 }

</bundles_post_ra>
